<compile_context>
chip_gen: v7x
topology: tpu7x:2x2x1
jax: 0.10.0
libtpu: 0.0.40
codegen_flags: <defaults>
</compile_context>

<pallas_src>
import functools

import jax
import jax.numpy as jnp
from jax.experimental import pallas as pl
from jax.experimental.pallas import tpu as pltpu


def _round_up(x, m):
    return (x + m - 1) // m * m


def _vmem_cap_bytes():
    try:
        return int(pltpu.get_tpu_info().vmem_capacity_bytes)
    except Exception:
        return 64 << 20      # conservative: v7x per-TensorCore VMEM


def _default_tq():
    try:
        kind = jax.devices()[0].device_kind.lower()
    except Exception:
        kind = ""
    # v5e MXU is 4x128^2 -> 128-row tiles saturate it; v6e/v7x are 2x256^2.
    return 128 if "v5" in kind else 256


# ---------------------------------------------------------------------------
# Kernel 1: fused QKV projection (once per (batch, row tile), not per q-tile).
# Weights are pre-transposed to (in, out); scale/bias for q already folded in
# by the wrapper.
# ---------------------------------------------------------------------------
def _qkv_proj_kernel(x_ref, wq_ref, wk_ref, wv_ref, bq_ref, bk_ref, bv_ref,
                     q_ref, k_ref, v_ref):
    x = x_ref[...]                                              # (TR, C) bf16
    q_ref[...] = (jnp.dot(x, wq_ref[...], preferred_element_type=jnp.float32)
                  + bq_ref[...]).astype(q_ref.dtype)
    k_ref[...] = (jnp.dot(x, wk_ref[...], preferred_element_type=jnp.float32)
                  + bk_ref[...]).astype(k_ref.dtype)
    v_ref[...] = (jnp.dot(x, wv_ref[...], preferred_element_type=jnp.float32)
                  + bv_ref[...]).astype(v_ref.dtype)


# ---------------------------------------------------------------------------
# Kernel 2: attention + accumulated output projection.
# grid = (batch, query_tiles, heads); the head axis is the innermost
# reduction ("arbitrary") axis carrying a lane-dense (TQ, C) f32 accumulator:
#   y = sum_h softmax(q_h k_h^T) v_h @ Wp_h   (+ bias at the last head).
# ---------------------------------------------------------------------------
def _attention_kernel(q_ref, k_ref, v_ref, wp_ref, bp_ref, o_ref, acc_ref, *,
                      num_valid):
    h = pl.program_id(2)

    q = q_ref[...]          # (TQ, D) bf16, softmax scale pre-folded into W_q
    k = k_ref[...]          # (NP, D) bf16
    v = v_ref[...]          # (NP, D) bf16

    # scores = q @ k.T without an in-kernel transpose (contract dim 1 w/ dim 1)
    s = jax.lax.dot_general(q, k, (((1,), (1,)), ((), ())),
                            preferred_element_type=jnp.float32)  # (TQ, NP) f32
    if num_valid < s.shape[1]:          # static: only when the wrapper padded N
        key_ids = jax.lax.broadcasted_iota(jnp.int32, s.shape, 1)
        s = jnp.where(key_ids < num_valid, s, -1e30)

    # Softmax in f32 (v5e has no bf16 VPU/EUP path anyway); approx reciprocal
    # runs on the EUP slot -- tiny normalization error, fine at bf16 tolerance.
    s = s - jnp.max(s, axis=-1, keepdims=True)
    p = jnp.exp(s)
    p = p * pl.reciprocal(jnp.sum(p, axis=-1, keepdims=True), approx=True)
    # attn_drop is identity (eval / p = 0.0).
    ctx = jnp.dot(p.astype(jnp.bfloat16), v,
                  preferred_element_type=jnp.float32)             # (TQ, D) f32

    @pl.when(h == 0)
    def _():
        acc_ref[...] = jnp.zeros_like(acc_ref)

    # Output projection folded into the head reduction -> full (TQ, C)
    # lane-dense accumulation, no masked D-wide partial stores.
    acc_ref[...] += jnp.dot(ctx.astype(jnp.bfloat16), wp_ref[...],
                            preferred_element_type=jnp.float32)   # (TQ, C) f32

    @pl.when(h == pl.num_programs(2) - 1)
    def _():
        # proj_drop is identity (eval / p = 0.0).
        o_ref[...] = (acc_ref[...] + bp_ref[...]).astype(o_ref.dtype)


def attention_pallas(x, w_qkv, w_proj, b_proj, num_heads, *,
                     b_qkv=None, qk_scale=None, tq=None):
    """Pallas forward for the BLIP ViT Attention module (eval mode).

    x: (B, N, C); w_qkv: (3C, C); w_proj: (C, C); b_proj: (C,);
    b_qkv: optional (3C,); tq: query-tile rows (defaults per TPU generation).
    """
    B, N, C = x.shape
    assert C % num_heads == 0
    D = C // num_heads
    scale = qk_scale if qk_scale is not None else D ** (-0.5)
    # TODO(synk): if C is not a multiple of 128 (real ViT: C=768 is), pad the
    # channel dim in the wrapper too for fully lane-dense weight/output slabs.

    # --- tiling / padding (sublane- & lane-friendly) ---
    if tq is None:
        tq = _default_tq()
    tq = max(16, _round_up(int(tq), 16))          # bf16 packs 16 rows/sublane
    n_align = 128 if N >= 128 else 16             # lane-dense key dim if possible
    n_pad = _round_up(N, n_align)
    tq = min(tq, n_pad)
    while n_pad % tq:                             # tq must divide the padded seq
        tq -= 16
    nq = n_pad // tq
    # TODO(synk): for very long sequences, tile the key dim too (flash-style
    # online softmax) so the (TQ, n_pad) f32 scores stay bounded on v7x VMEM.

    # --- weight prep: (in, out) layout, bf16 operands, scale folded into W_q ---
    w_qkv = jnp.asarray(w_qkv)
    w_q_t = (w_qkv[:C].T * scale).astype(jnp.bfloat16)            # (C, C)
    w_k_t = w_qkv[C:2 * C].T.astype(jnp.bfloat16)                 # (C, C)
    w_v_t = w_qkv[2 * C:].T.astype(jnp.bfloat16)                  # (C, C)
    if b_qkv is None:
        b_qkv = jnp.zeros((3 * C,), jnp.float32)
    b_qkv = jnp.asarray(b_qkv, jnp.float32)
    b_q = (b_qkv[:C] * scale).reshape(1, C)
    b_k = b_qkv[C:2 * C].reshape(1, C)
    b_v = b_qkv[2 * C:].reshape(1, C)
    w_p3 = jnp.asarray(w_proj).T.reshape(num_heads, D, C).astype(jnp.bfloat16)
    b_p = jnp.asarray(b_proj, jnp.float32).reshape(1, C)

    x_p = x.astype(jnp.bfloat16)
    if n_pad != N:
        x_p = jnp.pad(x_p, ((0, 0), (0, n_pad - N), (0, 0)))

    vmem_cap = _vmem_cap_bytes()

    # ---------------- kernel 1: QKV projection ----------------
    proj_foot = (2 * 2 * (tq * C + 3 * tq * C)            # x + q/k/v blocks, bf16, x2 buf
                 + 2 * (3 * C * C * 2 + 3 * C * 4)        # weights + biases (x2 buf)
                 + 4 * tq * C * 4)                        # f32 matmul results
    proj_vmem = int(min(vmem_cap - (8 << 20), max(32 << 20, 2 * proj_foot)))
    q_a, k_a, v_a = pl.pallas_call(
        _qkv_proj_kernel,
        out_shape=tuple(jax.ShapeDtypeStruct((B, n_pad, C), jnp.bfloat16)
                        for _ in range(3)),
        grid_spec=pltpu.PrefetchScalarGridSpec(
            num_scalar_prefetch=0,
            grid=(B, nq),
            in_specs=[
                pl.BlockSpec((None, tq, C), lambda b, t: (b, t, 0)),
                # Grid-invariant weights / biases (constant index_map -> fetched
                # once). TODO(synk): single-buffer via pipeline_mode=pl.Buffered(1)
                # on v7x if VMEM gets tight for very large C.
                pl.BlockSpec((C, C), lambda b, t: (0, 0)),
                pl.BlockSpec((C, C), lambda b, t: (0, 0)),
                pl.BlockSpec((C, C), lambda b, t: (0, 0)),
                pl.BlockSpec((1, C), lambda b, t: (0, 0)),
                pl.BlockSpec((1, C), lambda b, t: (0, 0)),
                pl.BlockSpec((1, C), lambda b, t: (0, 0)),
            ],
            out_specs=(
                pl.BlockSpec((None, tq, C), lambda b, t: (b, t, 0)),
                pl.BlockSpec((None, tq, C), lambda b, t: (b, t, 0)),
                pl.BlockSpec((None, tq, C), lambda b, t: (b, t, 0)),
            ),
        ),
        compiler_params=pltpu.CompilerParams(
            dimension_semantics=("parallel", "parallel"),
            vmem_limit_bytes=proj_vmem,
        ),
    )(x_p, w_q_t, w_k_t, w_v_t, b_q, b_k, b_v)

    # Head-major layout (B, H, n_pad, D): cheap XLA relayout so attention
    # blocks are plain 2-D tiles with D as a full trailing dim (no in-kernel
    # reshapes, no masked column slices).
    def to_heads(a):
        return a.reshape(B, n_pad, num_heads, D).transpose(0, 2, 1, 3)
    q_h, k_h, v_h = to_heads(q_a), to_heads(k_a), to_heads(v_a)

    # ---------------- kernel 2: attention + output projection ----------------
    out_bytes = jnp.dtype(x.dtype).itemsize
    attn_foot = (2 * 2 * (tq * D + 2 * n_pad * D + D * C)   # q,k,v,Wp_h blocks (bf16, x2)
                 + 2 * C * 4                                # bias
                 + 2 * tq * C * out_bytes                   # output block (x2)
                 + tq * C * 4                               # accumulator
                 + 3 * tq * n_pad * 4 + tq * D * 4)         # f32 scores/probs/ctx
    attn_vmem = int(min(vmem_cap - (8 << 20), max(32 << 20, 2 * attn_foot)))

    out = pl.pallas_call(
        functools.partial(_attention_kernel, num_valid=N),
        out_shape=jax.ShapeDtypeStruct((B, n_pad, C), x.dtype),
        grid_spec=pltpu.PrefetchScalarGridSpec(
            num_scalar_prefetch=0,
            grid=(B, nq, num_heads),        # head axis innermost (reduction)
            in_specs=[
                pl.BlockSpec((None, None, tq, D), lambda b, t, h: (b, h, t, 0)),
                pl.BlockSpec((None, None, n_pad, D), lambda b, t, h: (b, h, 0, 0)),
                pl.BlockSpec((None, None, n_pad, D), lambda b, t, h: (b, h, 0, 0)),
                pl.BlockSpec((None, D, C), lambda b, t, h: (h, 0, 0)),
                pl.BlockSpec((1, C), lambda b, t, h: (0, 0)),
            ],
            out_specs=pl.BlockSpec((None, tq, C), lambda b, t, h: (b, t, 0)),
            scratch_shapes=[pltpu.VMEM((tq, C), jnp.float32)],
        ),
        compiler_params=pltpu.CompilerParams(
            # Batch & query-tile axes are independent -> keep both v7x
            # TensorCores busy (when B == 1, pick tq so nq > 1); the head axis
            # carries the accumulator so it must stay sequential.
            dimension_semantics=("parallel", "parallel", "arbitrary"),
            vmem_limit_bytes=attn_vmem,
        ),
    )(q_h, k_h, v_h, w_p3, b_p)

    return out[:, :N, :] if n_pad != N else out


def attention_reference(x, w_qkv, w_proj, b_proj, num_heads,
                        b_qkv=None, qk_scale=None):
    """Pure-JAX f32 reference mirroring the PyTorch forward."""
    B, N, C = x.shape
    D = C // num_heads
    scale = qk_scale if qk_scale is not None else D ** (-0.5)
    qkv = x @ w_qkv.T
    if b_qkv is not None:
        qkv = qkv + b_qkv
    qkv = qkv.reshape(B, N, 3, num_heads, D).transpose(2, 0, 3, 1, 4)
    q, k, v = qkv[0], qkv[1], qkv[2]                      # (B, H, N, D)
    attn = (q @ jnp.swapaxes(k, -2, -1)) * scale          # (B, H, N, N)
    attn = jax.nn.softmax(attn, axis=-1)
    out = (attn @ v).transpose(0, 2, 1, 3).reshape(B, N, C)
    return out @ w_proj.T + b_proj


if __name__ == "__main__":
    # N=24 is deliberately NOT a multiple of the query tile -> exercises the
    # pad + key-masking path (with a nonzero qkv bias so unmasked padded keys
    # would actually corrupt the result).
    B, N, C = 2, 24, 32
    num_heads = 4

    key = jax.random.PRNGKey(0)
    kx, kq, kb1, kp, kb2 = jax.random.split(key, 5)
    x = jax.random.normal(kx, (B, N, C), dtype=jnp.float32)
    w_qkv = jax.random.normal(kq, (3 * C, C), dtype=jnp.float32) * 0.05
    b_qkv = jax.random.normal(kb1, (3 * C,), dtype=jnp.float32) * 0.05
    w_proj = jax.random.normal(kp, (C, C), dtype=jnp.float32) * 0.05
    b_proj = jax.random.normal(kb2, (C,), dtype=jnp.float32) * 0.05

    out = attention_pallas(x, w_qkv, w_proj, b_proj, num_heads,
                           b_qkv=b_qkv, tq=16)
    out = jax.block_until_ready(out)

    ref = attention_reference(x, w_qkv, w_proj, b_proj, num_heads, b_qkv=b_qkv)
    assert out.shape == (B, N, C)
    # bf16 matmul operands (f32 accumulation) + approx reciprocal -> bf16-level
    # tolerance.
    assert jnp.allclose(out, ref, atol=2e-2, rtol=2e-2), "mismatch vs reference"

    print("KERNEL_OK")
</pallas_src>

<mosaic_0001>
module attributes {stable_mosaic.version = 11 : i64} {
  func.func @_qkv_proj_kernel(%arg0: i32, %arg1: i32, %arg2: memref<1x16x32xbf16, #tpu.memory_space<vmem>>, %arg3: memref<32x32xbf16, #tpu.memory_space<vmem>>, %arg4: memref<32x32xbf16, #tpu.memory_space<vmem>>, %arg5: memref<32x32xbf16, #tpu.memory_space<vmem>>, %arg6: memref<1x32xf32, #tpu.memory_space<vmem>>, %arg7: memref<1x32xf32, #tpu.memory_space<vmem>>, %arg8: memref<1x32xf32, #tpu.memory_space<vmem>>, %arg9: memref<1x16x32xbf16, #tpu.memory_space<vmem>>, %arg10: memref<1x16x32xbf16, #tpu.memory_space<vmem>>, %arg11: memref<1x16x32xbf16, #tpu.memory_space<vmem>>) attributes {dimension_semantics = [#tpu.dimension_semantics<parallel>, #tpu.dimension_semantics<parallel>], iteration_bounds = array<i64: 2, 2>, scalar_prefetch = 0 : i64, scratch_operands = 0 : i64, tpu.core_type = #tpu.core_type<tc>, window_params = [{transform_indices = @transform_0, window_bounds = array<i64: 1, 16, 32>}, {pipeline_mode = #tpu.pipeline_mode<synchronous>, transform_indices = @transform_1, window_bounds = array<i64: 32, 32>}, {pipeline_mode = #tpu.pipeline_mode<synchronous>, transform_indices = @transform_2, window_bounds = array<i64: 32, 32>}, {pipeline_mode = #tpu.pipeline_mode<synchronous>, transform_indices = @transform_3, window_bounds = array<i64: 32, 32>}, {pipeline_mode = #tpu.pipeline_mode<synchronous>, transform_indices = @transform_4, window_bounds = array<i64: 1, 32>}, {pipeline_mode = #tpu.pipeline_mode<synchronous>, transform_indices = @transform_5, window_bounds = array<i64: 1, 32>}, {pipeline_mode = #tpu.pipeline_mode<synchronous>, transform_indices = @transform_6, window_bounds = array<i64: 1, 32>}, {transform_indices = @transform_7, window_bounds = array<i64: 1, 16, 32>}, {transform_indices = @transform_8, window_bounds = array<i64: 1, 16, 32>}, {transform_indices = @transform_9, window_bounds = array<i64: 1, 16, 32>}]} {
    %c0 = arith.constant 0 : index
    %c0_0 = arith.constant 0 : index
    %c0_1 = arith.constant 0 : index
    %0 = vector.load %arg2[%c0, %c0_0, %c0_1] : memref<1x16x32xbf16, #tpu.memory_space<vmem>>, vector<1x16x32xbf16>
    %1 = vector.shape_cast %0 : vector<1x16x32xbf16> to vector<16x32xbf16>
    %c0_2 = arith.constant 0 : index
    %c0_3 = arith.constant 0 : index
    %2 = vector.load %arg3[%c0_2, %c0_3] : memref<32x32xbf16, #tpu.memory_space<vmem>>, vector<32x32xbf16>
    %cst = arith.constant dense<0.000000e+00> : vector<16x32xf32>
    %3 = tpu.matmul %1, %2, %cst {dimension_numbers = #tpu.dot_dimension_numbers<[1], [0], [0], [1], [0, 0, 1, 1], [], []>} : vector<16x32xbf16>, vector<32x32xbf16>, vector<16x32xf32> -> vector<16x32xf32>
    %c0_4 = arith.constant 0 : index
    %c0_5 = arith.constant 0 : index
    %4 = vector.load %arg6[%c0_4, %c0_5] : memref<1x32xf32, #tpu.memory_space<vmem>>, vector<1x32xf32>
    %5 = vector.broadcast %4 : vector<1x32xf32> to vector<16x32xf32>
    %6 = arith.addf %3, %5 : vector<16x32xf32>
    %7 = arith.truncf %6 : vector<16x32xf32> to vector<16x32xbf16>
    %c0_6 = arith.constant 0 : index
    %c0_7 = arith.constant 0 : index
    %c0_8 = arith.constant 0 : index
    %8 = vector.load %arg9[%c0_6, %c0_7, %c0_8] : memref<1x16x32xbf16, #tpu.memory_space<vmem>>, vector<1x16x32xbf16>
    %9 = vector.shape_cast %8 : vector<1x16x32xbf16> to vector<16x32xbf16>
    %10 = vector.shape_cast %7 : vector<16x32xbf16> to vector<1x16x32xbf16>
    tpu.vector_store %arg9[%c0_6, %c0_7, %c0_8], %10 {strides = array<i32>} : memref<1x16x32xbf16, #tpu.memory_space<vmem>>, vector<1x16x32xbf16>,
    %c0_9 = arith.constant 0 : index
    %c0_10 = arith.constant 0 : index
    %11 = vector.load %arg4[%c0_9, %c0_10] : memref<32x32xbf16, #tpu.memory_space<vmem>>, vector<32x32xbf16>
    %cst_11 = arith.constant dense<0.000000e+00> : vector<16x32xf32>
    %12 = tpu.matmul %1, %11, %cst_11 {dimension_numbers = #tpu.dot_dimension_numbers<[1], [0], [0], [1], [0, 0, 1, 1], [], []>} : vector<16x32xbf16>, vector<32x32xbf16>, vector<16x32xf32> -> vector<16x32xf32>
    %c0_12 = arith.constant 0 : index
    %c0_13 = arith.constant 0 : index
    %13 = vector.load %arg7[%c0_12, %c0_13] : memref<1x32xf32, #tpu.memory_space<vmem>>, vector<1x32xf32>
    %14 = vector.broadcast %13 : vector<1x32xf32> to vector<16x32xf32>
    %15 = arith.addf %12, %14 : vector<16x32xf32>
    %16 = arith.truncf %15 : vector<16x32xf32> to vector<16x32xbf16>
    %c0_14 = arith.constant 0 : index
    %c0_15 = arith.constant 0 : index
    %c0_16 = arith.constant 0 : index
    %17 = vector.load %arg10[%c0_14, %c0_15, %c0_16] : memref<1x16x32xbf16, #tpu.memory_space<vmem>>, vector<1x16x32xbf16>
    %18 = vector.shape_cast %17 : vector<1x16x32xbf16> to vector<16x32xbf16>
    %19 = vector.shape_cast %16 : vector<16x32xbf16> to vector<1x16x32xbf16>
    tpu.vector_store %arg10[%c0_14, %c0_15, %c0_16], %19 {strides = array<i32>} : memref<1x16x32xbf16, #tpu.memory_space<vmem>>, vector<1x16x32xbf16>,
    %c0_17 = arith.constant 0 : index
    %c0_18 = arith.constant 0 : index
    %20 = vector.load %arg5[%c0_17, %c0_18] : memref<32x32xbf16, #tpu.memory_space<vmem>>, vector<32x32xbf16>
    %cst_19 = arith.constant dense<0.000000e+00> : vector<16x32xf32>
    %21 = tpu.matmul %1, %20, %cst_19 {dimension_numbers = #tpu.dot_dimension_numbers<[1], [0], [0], [1], [0, 0, 1, 1], [], []>} : vector<16x32xbf16>, vector<32x32xbf16>, vector<16x32xf32> -> vector<16x32xf32>
    %c0_20 = arith.constant 0 : index
    %c0_21 = arith.constant 0 : index
    %22 = vector.load %arg8[%c0_20, %c0_21] : memref<1x32xf32, #tpu.memory_space<vmem>>, vector<1x32xf32>
    %23 = vector.broadcast %22 : vector<1x32xf32> to vector<16x32xf32>
    %24 = arith.addf %21, %23 : vector<16x32xf32>
    %25 = arith.truncf %24 : vector<16x32xf32> to vector<16x32xbf16>
    %c0_22 = arith.constant 0 : index
    %c0_23 = arith.constant 0 : index
    %c0_24 = arith.constant 0 : index
    %26 = vector.load %arg11[%c0_22, %c0_23, %c0_24] : memref<1x16x32xbf16, #tpu.memory_space<vmem>>, vector<1x16x32xbf16>
    %27 = vector.shape_cast %26 : vector<1x16x32xbf16> to vector<16x32xbf16>
    %28 = vector.shape_cast %25 : vector<16x32xbf16> to vector<1x16x32xbf16>
    tpu.vector_store %arg11[%c0_22, %c0_23, %c0_24], %28 {strides = array<i32>} : memref<1x16x32xbf16, #tpu.memory_space<vmem>>, vector<1x16x32xbf16>,
    return
  }
  func.func @transform_0(%arg0: i32, %arg1: i32) -> (i32, i32, i32) {
    %c0_i32 = arith.constant 0 : i32
    %c0_i32_0 = arith.constant 0 : i32
    return %arg0, %arg1, %c0_i32 : i32, i32, i32
  }
  func.func @transform_1(%arg0: i32, %arg1: i32) -> (i32, i32) {
    %c0_i32 = arith.constant 0 : i32
    %c0_i32_0 = arith.constant 0 : i32
    %c0_i32_1 = arith.constant 0 : i32
    return %c0_i32, %c0_i32_0 : i32, i32
  }
  func.func @transform_2(%arg0: i32, %arg1: i32) -> (i32, i32) {
    %c0_i32 = arith.constant 0 : i32
    %c0_i32_0 = arith.constant 0 : i32
    %c0_i32_1 = arith.constant 0 : i32
    return %c0_i32, %c0_i32_0 : i32, i32
  }
  func.func @transform_3(%arg0: i32, %arg1: i32) -> (i32, i32) {
    %c0_i32 = arith.constant 0 : i32
    %c0_i32_0 = arith.constant 0 : i32
    %c0_i32_1 = arith.constant 0 : i32
    return %c0_i32, %c0_i32_0 : i32, i32
  }
  func.func @transform_4(%arg0: i32, %arg1: i32) -> (i32, i32) {
    %c0_i32 = arith.constant 0 : i32
    %c0_i32_0 = arith.constant 0 : i32
    %c0_i32_1 = arith.constant 0 : i32
    return %c0_i32, %c0_i32_0 : i32, i32
  }
  func.func @transform_5(%arg0: i32, %arg1: i32) -> (i32, i32) {
    %c0_i32 = arith.constant 0 : i32
    %c0_i32_0 = arith.constant 0 : i32
    %c0_i32_1 = arith.constant 0 : i32
    return %c0_i32, %c0_i32_0 : i32, i32
  }
  func.func @transform_6(%arg0: i32, %arg1: i32) -> (i32, i32) {
    %c0_i32 = arith.constant 0 : i32
    %c0_i32_0 = arith.constant 0 : i32
    %c0_i32_1 = arith.constant 0 : i32
    return %c0_i32, %c0_i32_0 : i32, i32
  }
  func.func @transform_7(%arg0: i32, %arg1: i32) -> (i32, i32, i32) {
    %c0_i32 = arith.constant 0 : i32
    %c0_i32_0 = arith.constant 0 : i32
    return %arg0, %arg1, %c0_i32 : i32, i32, i32
  }
  func.func @transform_8(%arg0: i32, %arg1: i32) -> (i32, i32, i32) {
    %c0_i32 = arith.constant 0 : i32
    %c0_i32_0 = arith.constant 0 : i32
    return %arg0, %arg1, %c0_i32 : i32, i32, i32
  }
  func.func @transform_9(%arg0: i32, %arg1: i32) -> (i32, i32, i32) {
    %c0_i32 = arith.constant 0 : i32
    %c0_i32_0 = arith.constant 0 : i32
    return %arg0, %arg1, %c0_i32 : i32, i32, i32
  }
}

</mosaic_0001>

<bundles_post_ra>
// kernel: tpu_custom_call.1
= control target key start
LH: loop header
LB: loop body
LE: loop exit
PB: predicated region body
PF: predicated region fallthrough
CT: control target
= control target key end

     0   :  { %s1927_s0 = inlined_call_operand.hbm [shape: bf16[2,32,32], index: 0, kind: input, shape index: {}]   ;;  %s1928_s1 = inlined_call_operand.hbm [shape: bf16[32,32], index: 1, kind: input, shape index: {}]   ;;  %s1929_s2 = inlined_call_operand.hbm [shape: bf16[32,32], index: 2, kind: input, shape index: {}]   ;;  %s1930_s3 = inlined_call_operand.hbm [shape: bf16[32,32], index: 3, kind: input, shape index: {}]   ;;  %s1931_s4 = inlined_call_operand.vmem [shape: f32[1,32], index: 4, kind: input, shape index: {}]   ;;  %s1932_s5 = inlined_call_operand.vmem [shape: f32[1,32], index: 5, kind: input, shape index: {}]   ;;  %s1933_s6 = inlined_call_operand.vmem [shape: f32[1,32], index: 6, kind: input, shape index: {}]   ;;  %s1934_s7 = inlined_call_operand.hbm [shape: bf16[2,32,32], index: 7, kind: output, shape index: {0}]   ;;  %s1935_s8 = inlined_call_operand.hbm [shape: bf16[2,32,32], index: 8, kind: output, shape index: {1}]   ;;  %s1936_s9 = inlined_call_operand.hbm [shape: bf16[2,32,32], index: 9, kind: output, shape index: {2}]  }
   0x1   :  { %1949 = sst [smem:[#allocation22_spill]] %s1928_s1 }
   0x2   :  { %1950 = sst [smem:[#allocation23_spill]] %s1929_s2 }
   0x3   :  { %1951 = sst [smem:[#allocation24_spill]] %s1930_s3 }
   0x4   :  { %1952 = sst [smem:[#allocation25_spill]] %s1932_s5 }
   0x5   :  { %1953 = sst [smem:[#allocation26_spill]] %s1933_s6 }
   0x6   :  { %1954 = sst [smem:[#allocation27_spill]] %s1934_s7 }
   0x7   :  { %1955 = sst [smem:[#allocation28_spill]] %s1935_s8 }
   0x8   :  { %1956 = sst [smem:[#allocation29_spill]] %s1936_s9 }
   0x9   :  { %15 = vsyncpa [#allocation3], 0 }
   0xa   :  { %17 = vsyncpa [#allocation3 + $0x1], 0 }
   0xb   :  { %18 = vsyncpa [#allocation6], 0 }
   0xc   :  { %19 = vsyncpa [#allocation9], 0 }
   0xd   :  { %20 = vsyncpa [#allocation4], 0 }
   0xe   :  { %22 = vsyncpa [#allocation4 + $0x1], 0 }
   0xf   :  { %23 = vsyncpa [#allocation12], 0 }
  0x10   :  { %25 = vsyncpa [#allocation12 + $0x1], 0  ;;  %s1490_s30 = smov 0   ;;  %s1492_s10 = smov 0  }
  0x11   :  { %s1494_s11 = smov 0   ;;  %s1496_s12 = smov 0  }
  0x12   :  { %s1498_s13 = smov 0   ;;  %s1500_s14 = smov 0  }
  0x13   :  { %s1502_s15 = smov 0   ;;  %s1504_s16 = smov 0  }
  0x14 LB: > { %1957 = sst [smem:[#allocation19_spill]] %s1397_s30  ;;  %s1531_s17 = sadd.s32 4294967295, %s1425_s16   ;;  %s1425_s16 = sphi %s1504_s16, %s31_s16   ;;  %s1421_s15 = sphi %s1502_s15, %s1996_s15   ;;  %s1417_s14 = sphi %s1500_s14, %s1995_s14   ;;  %s1413_s13 = sphi %s1498_s13, %s1994_s13   ;;  %s1409_s12 = sphi %s1496_s12, %s1993_s12   ;;  %s1405_s11 = sphi %s1494_s11, %s1992_s11   ;;  %s1401_s10 = sphi %s1492_s10, %s1991_s10   ;;  %s1397_s30 = sphi %s1490_s30, %s1990_s30  }
  0x15   : > { %s1937_s18 = sadd.s32 4294967294, %s1425_s16   ;;  %p65_p0 = scmp.ne.s32.totalorder %s1401_s10, %s1397_s30 }
  0x16   : > { %p1941_p1 = scmp.eq.s32.totalorder %s1531_s17, 0  ;;  %p223_p3 = scmp.eq.s32.totalorder %s1937_s18, 3 }
  0x17   : > { %p924_p5 = scmp.ge.s32.totalorder %s1425_s16, 1  ;;  %p286_p7 = scmp.lt.s32.totalorder %s1425_s16, 5 }
  0x18   : > { %p1542_p4 = por %p1941_p1, %p65_p0  ;;  %p1547_p6 = por %p223_p3, %p65_p0 }
  0x19   : > { %p1552_p8 = pnand %p924_p5, %p286_p7  ;;  %s1427_s22 = smov [#allocation5]  }
  0x1a   : > { %s1958_s19 = scalar_select %p1542_p4, 1, 0 }
  0x1b   : > { %s1959_s20 = scalar_select %p1547_p6, 1, 0 }
  0x1c   : > { %s1961_s21 = scalar_select %p1552_p8, 1, 0 }
  0x1d   : > { %1960 = sst [smem:[#allocation20_spill]] %s1959_s20  ;;  %s298_s23 = sshll.u32 %s1427_s22, 4  ;;  %s1556_s23 = int_to_ptr.vmem [resolvable:$true] %s298_s23 }
  0x1e   : > { %p1033_p9 = pneg %p1552_p8  ;;  %s1428_s25 = smov [#allocation7]  }
  0x1f   : > { %s311_s26 = sshll.u32 %s1428_s25, 4  ;;  %s1429_s27 = smov [#allocation8]   ;;  %s1566_s26 = int_to_ptr.vmem [resolvable:$true] %s311_s26 }
  0x20   : > { %p1562_p10 = pnand %p1033_p9, %p1941_p1  ;;  %s1568_s28 = sshll.u32 %s1429_s27, 4  ;;  %s325_s28 = int_to_ptr.vmem [resolvable:$true] %s1568_s28 }
  0x21   : > { %s1963_s1 = sld [smem:[#allocation22_spill]] }
  0x22   : > { %p1578_p12 = pneg %p1562_p10 }
  0x27   : > { %s1145_s22 = scalar_lea.hbm %s1963_s1, 256 }
  0x28   : > { %p1146_p11 = scmp.ne.s32.totalorder %s1963_s1, %s1145_s22  ;;  %p1152_p3 = scmp.lt.u32.totalorder %s1145_s22, %s1963_s1 }
  0x2a   : > { %p1148_p13 = pnand %p1578_p12, %p1146_p11 }
  0x2c   : > { %p1149_p0 = pneg %p1148_p13 }
  0x2e   : > { %p1154_p5 = pnand %p1152_p3, %p1149_p0 }
  0x30   : > { %1157 = shalt.err (!%p1154_p5)
}
  0x31   : > { %s1158_s30 = scalar_lea.vmem %s1556_s23, 256  ;;  %p1166_p2 = scmp.lt.s32.totalorder %s1556_s23, %s1556_s23 }
  0x32   : > { %p1159_p7 = scmp.ne.s32.totalorder %s1556_s23, %s1158_s30  ;;  %p1167_p6 = scmp.lt.s32.totalorder %s1158_s30, %s1158_s30 }
  0x34   : > { %p1161_p9 = pnand %p1159_p7, %p1578_p12  ;;  %p1168_p11 = por %p1167_p6, %p1166_p2 }
  0x36   : > { %p1162_p1 = pneg %p1161_p9 }
  0x38   : > { %p1169_p13 = pnand %p1168_p11, %p1162_p1 }
  0x3a   : > { %1172 = shalt.err (!%p1169_p13)
}
  0x3b   : > { %s1946_s18 = smov 64   ;;  %s1947_s20 = smov 4  }
  0x3c   : > { %1036 = dma.hbm_to_vmem [thread:$0]  (!%p1562_p10), %s1963_s1, 256, %s1556_s23, [#allocation6], %s1946_s18, %s1946_s18, %s1947_s20  }
  0x3d   : > { %s1965_s2 = sld [smem:[#allocation23_spill]] }
  0x43   : > { %s1173_s30 = scalar_lea.hbm %s1965_s2, 256 }
  0x44   : > { %p1174_p1 = scmp.ne.s32.totalorder %s1965_s2, %s1173_s30  ;;  %p1180_p0 = scmp.lt.u32.totalorder %s1173_s30, %s1965_s2 }
  0x46   : > { %p1176_p2 = pnand %p1174_p1, %p1578_p12 }
  0x48   : > { %p1177_p6 = pneg %p1176_p2 }
  0x4a   : > { %p1182_p3 = pnand %p1180_p0, %p1177_p6 }
  0x4c   : > { %1185 = shalt.err (!%p1182_p3)
}
  0x4d   : > { %s1186_s23 = scalar_lea.vmem %s1566_s26, 256  ;;  %p1194_p11 = scmp.lt.s32.totalorder %s1566_s26, %s1566_s26 }
  0x4e   : > { %p1187_p5 = scmp.ne.s32.totalorder %s1566_s26, %s1186_s23  ;;  %p1195_p13 = scmp.lt.s32.totalorder %s1186_s23, %s1186_s23 }
  0x50   : > { %p1189_p7 = pnand %p1187_p5, %p1578_p12  ;;  %p1196_p1 = por %p1195_p13, %p1194_p11 }
  0x52   : > { %p1190_p9 = pneg %p1189_p7 }
  0x54   : > { %p1197_p2 = pnand %p1196_p1, %p1190_p9 }
  0x56   : > { %1200 = shalt.err (!%p1197_p2)
}
  0x57   : > { %1039 = dma.hbm_to_vmem [thread:$0]  (!%p1562_p10), %s1965_s2, 256, %s1566_s26, [#allocation6], %s1946_s18, %s1946_s18, %s1947_s20  }
  0x58   : > { %s1966_s3 = sld [smem:[#allocation24_spill]] }
  0x5e   : > { %s1201_s29 = scalar_lea.hbm %s1966_s3, 256 }
  0x5f   : > { %p1202_p6 = scmp.ne.s32.totalorder %s1966_s3, %s1201_s29  ;;  %p1208_p5 = scmp.lt.u32.totalorder %s1201_s29, %s1966_s3 }
  0x61   : > { %p1204_p0 = pnand %p1202_p6, %p1578_p12 }
  0x63   : > { %p1205_p3 = pneg %p1204_p0 }
  0x65   : > { %p1210_p7 = pnand %p1208_p5, %p1205_p3 }
  0x67   : > { %1213 = shalt.err (!%p1210_p7)
}
  0x68   : > { %s1214_s23 = scalar_lea.vmem %s325_s28, 256  ;;  %p1222_p1 = scmp.lt.s32.totalorder %s325_s28, %s325_s28 }
  0x69   : > { %p1215_p9 = scmp.ne.s32.totalorder %s325_s28, %s1214_s23  ;;  %p1223_p2 = scmp.lt.s32.totalorder %s1214_s23, %s1214_s23 }
  0x6b   : > { %p1217_p11 = pnand %p1215_p9, %p1578_p12  ;;  %p1224_p4 = por %p1223_p2, %p1222_p1 }
  0x6d   : > { %p1218_p13 = pneg %p1217_p11 }
  0x6f   : > { %p1225_p8 = pnand %p1224_p4, %p1218_p13 }
  0x71   : > { %1228 = shalt.err (!%p1225_p8)
}
  0x72   : > { %1042 = dma.hbm_to_vmem [thread:$0]  (!%p1562_p10), %s1966_s3, 256, %s325_s28, [#allocation9], %s1946_s18, %s1946_s18, %s1947_s20  }
  0x73   : > { %s40_s9 = sadd.s32 1, %s1417_s14  ;;  %s43_s24 = sadd.s32 1, %s1421_s15 }
  0x74   : > { %p41_p4 = scmp.ge.s32.totalorder %s40_s9, 2  ;;  %s52_s6 = sadd.s32 1, %s1405_s11 }
  0x75   : > { %p59_p8 = scmp.ne.s32.totalorder %s1405_s11, %s1401_s10  ;;  %p60_p12 = scmp.eq.s32.totalorder %s1425_s16, 0 }
  0x76   : > { %s1998_s9 = smov (%p41_p4, %s40_s9), 0  ;;  %s2000_s24 = smov (!%p41_p4, %s43_s24), %s1421_s15 }
  0x77   : > { %s48_s7 = ssub.s32 %s1417_s14, %s1998_s9  ;;  %p45_p6 = scmp.ge.s32.totalorder %s2000_s24, 2 }
  0x78   : > { %p1967_p0 = scmp.eq.s32.totalorder %s1531_s17, 3  ;;  %p1667_p10 = por %p60_p12, %p59_p8 }
  0x79   : > { %p1060_p5 = scmp.lt.s32.totalorder %s1425_s16, 4  ;;  %s2002_s24 = smov (%p45_p6, %s2000_s24), 0 }
  0x7a   : > { %p1663_p3 = por %p1967_p0, %p59_p8  ;;  %1970 = sst [smem:[#allocation21_spill]] %s2002_s24 }
  0x7b   : > { %s347_s29 = sand.u32 1, %s1405_s11   ;;  %s930_s22 = sshll.u32 %s1417_s14, 1 }
  0x7c   : > { %s47_s25 = ssub.s32 %s1421_s15, %s2002_s24  ;;  %s929_s30 = sshll.u32 %s347_s29, 3 }
  0x7d   : > { %s49_s27 = sor.u32 %s48_s7, %s47_s25  ;;  %s931_s23 = sshll.u32 %s1421_s15, 2 }
  0x7e   : > { %p50_p7 = scmp.eq.s32.totalorder %s49_s27, 0  ;;  %s351_s26 = scalar_lea.vmem [#allocation2], %s929_s30 }
  0x7f   : > { %s360_s5 = sshll.u32 %s351_s26, 4  ;;  %s357_s20 = sadd.s32 %s931_s23, %s930_s22  ;;  %s1682_s5 = int_to_ptr.vmem [resolvable:$true] %s360_s5 }
  0x80   : > { %s1680_s18 = scalar_select %p50_p7, %s1405_s11, %s52_s6  }
  0x81   : > { %s932_s1 = sshll.u32 %s357_s20, 6  ;;  %p1688_p9 = pnand %p1060_p5, %p1667_p10 }
  0x82   : > { %s1695_s7 = scalar_lea.hbm %s1927_s0, %s932_s1  ;;  %s1697_s6 = scalar_lea.sflag [#allocation3], %s347_s29 }
  0x83   : > { %s1229_s20 = scalar_lea.hbm %s1695_s7, 128  ;;  %p1231_p13 = pneg %p1688_p9 }
  0x84   : > { %p1230_p11 = scmp.ne.s32.totalorder %s1695_s7, %s1229_s20  ;;  %s1234_s24 = scalar_lea.hbm %s1927_s0, 512 }
  0x85   : > { %p1235_p4 = scmp.lt.u32.totalorder %s1695_s7, %s1927_s0  ;;  %p1236_p8 = scmp.lt.u32.totalorder %s1234_s24, %s1229_s20 }
  0x86   : > { %p1232_p1 = pnand %p1231_p13, %p1230_p11  ;;  %p1238_p6 = scmp.lt.u32.totalorder %s1229_s20, %s1695_s7 }
  0x87   : > { %p1237_p12 = por %p1236_p8, %p1235_p4 }
  0x88   : > { %p1233_p2 = pneg %p1232_p1 }
  0x89   : > { %p1239_p0 = por %p1238_p6, %p1237_p12 }
  0x8b   : > { %p1240_p10 = pnand %p1239_p0, %p1233_p2 }
  0x8d   : > { %1243 = shalt.err (!%p1240_p10)
}
  0x8e   : > { %s1244_s29 = scalar_lea.vmem %s1682_s5, 128  ;;  %s1432_s25 = smov [#allocation2]  }
  0x8f   : > { %p1245_p5 = scmp.ne.s32.totalorder %s1682_s5, %s1244_s29  ;;  %s1249_s27 = sshll.u32 %s1432_s25, 4  ;;  %s1250_s27 = int_to_ptr.vmem [resolvable:$false] %s1249_s27 }
  0x90   : > { %s1251_s30 = scalar_lea.vmem %s1250_s27, 256  ;;  %p1252_p1 = scmp.lt.s32.totalorder %s1682_s5, %s1250_s27 }
  0x91   : > { %p1247_p7 = pnand %p1245_p5, %p1231_p13  ;;  %p1253_p4 = scmp.lt.s32.totalorder %s1251_s30, %s1244_s29 }
  0x93   : > { %p1248_p11 = pneg %p1247_p7  ;;  %p1254_p8 = por %p1253_p4, %p1252_p1 }
  0x95   : > { %p1255_p12 = pnand %p1254_p8, %p1248_p11 }
  0x97   : > { %1258 = shalt.err (!%p1255_p12)
}
  0x98   : > { %s1972_s23 = smov 4   ;;  %s1973_s26 = smov 64  }
  0x99   : > { %1046 = dma.hbm_to_vmem [thread:$0]  (!%p1688_p9), %s1695_s7, 128, %s1682_s5, %s1697_s6, %s1973_s26, %s1973_s26, %s1972_s23  }
  0x9a   : > { %p1974_p13 = scmp.ne.s32.totalorder %s1961_s21, 0 }
  0x9b   : > { %s1731_s20 = sand.u32 (!%p1974_p13), 1, %s1401_s10   ;;  %p1975_p2 = scmp.ne.s32.totalorder (!%p1974_p13), %s1958_s19, 0 }
  0x9c   : > { %372 = sbr.rel (%p1974_p13) target bundleno = 467 (0x1d3), region = 48  ;;  %s1734_s28 = sshll.u32 (!%p1974_p13), %s1731_s20, 3 }
  0x9d   : > { %s375_s2 = scalar_lea.sflag (!%p1974_p13), [#allocation3], %s1731_s20  ;;  %s378_s3 = scalar_lea.vmem (!%p1974_p13), [#allocation2], %s1734_s28 }
  0xa3   : > { %1376 = dma.done.wait (%p1975_p2), %s375_s2, 128  }
  0xa4   : > { %1378 = vsyncadd (%p1975_p2), %s375_s2, 4294967168  ;;  %p1976_p9 = scmp.eq.s32.totalorder %s1531_s17, 0 }
  0xa6   : > { %1380 = dma.done.wait (%p1976_p9), [#allocation6], 512   ;;  %p1977_p6 = pmov %p1976_p9 }
  0xa8   : > { %1382 = vsyncadd (%p1977_p6), [#allocation6], 4294966784  ;;  %p1978_p0 = pmov %p1977_p6 }
  0xaa   : > { %1384 = dma.done.wait (%p1978_p0), [#allocation9], 256   ;;  %p1979_p10 = pmov %p1978_p0 }
  0xab   : > { %v1433_v0 = vmov 0.0   ;;  %vm1434_vm0 = vmmov 0   ;;  %v1138_v1 = vld [vmem:[#allocation5] sm:$0xff]   ;;  %v1139_v2 = vld [vmem:[#allocation5 + $0x8] sm:$0xff]   ;;  %v1140_v3 = vld [vmem:[#allocation7] sm:$0xff]   ;;  %vm470_vm1 = vcmask 261120  }
  0xac   : > { %1386 = vsyncadd (%p1979_p10), [#allocation9], 4294967040  ;;  %989 = vmatprep.subr.bf16.mxu0 %v1433_v0  ;;  %997 = vmatprep.subr.bf16.mxu1 %v1433_v0  ;;  %v1141_v4 = vld [vmem:[%s378_s3] sm:$0xff]   ;;  %v1142_v6 = vld [vmem:[#allocation8] sm:$0xff]   ;;  %s963_s19 = sshll.u32 %s1409_s12, 1  ;;  %s964_s21 = sshll.u32 %s1413_s13, 2 }
  0xad   : > { %993 = vmatprep.mubr.msk.bf16.mxu0 %vm1434_vm0, %v1433_v0  ;;  %1001 = vmatprep.mubr.msk.bf16.mxu1 %vm1434_vm0, %v1433_v0  ;;  %v1143_v5 = vld [vmem:[#allocation7 + $0x8] sm:$0xff]   ;;  %v1144_v7 = vld [vmem:[#allocation8 + $0x8] sm:$0xff]   ;;  %v941_v8 = vld [vmem:[%s1931_s4] ss:$0 sm:$0xff]  ;;  %s697_s6 = sadd.s32 %s964_s21, %s963_s19  ;;  %s1980_s22 = sld [smem:[#allocation25_spill]]  ;;  %vm523_vm2 = vcmask 257024  }
  0xae   : > { %990 = vmatpush3.bf16.msra.mxu0 %v1138_v1  ;;  %998 = vmatpush3.bf16.msra.mxu1 %v1140_v3  ;;  %s420_s29 = scalar_lea.vmem [#allocation10], %s1734_s28  ;;  %s1763_s12 = scalar_lea.vmem [#allocation11], %s1734_s28 }
  0xaf   : > { %991 = vmatprep.subr.bf16.mxu0 %v1433_v0  ;;  %999 = vmatprep.subr.bf16.mxu1 %v1433_v0  ;;  %s700_s25 = sshll.u32 %s420_s29, 4  ;;  %s718_s13 = sshll.u32 %s1763_s12, 4  ;;  %s1776_s25 = int_to_ptr.vmem [resolvable:$true] %s700_s25  ;;  %s1792_s13 = int_to_ptr.vmem [resolvable:$true] %s718_s13 }
  0xb0   : > { %s1766_s27 = sshll.u32 %s697_s6, 6  ;;  %s679_s30 = sand.u32 1, %s1531_s17  }
  0xb1   : > { %s1981_s2 = sld [smem:[#allocation27_spill]]  ;;  %s1982_s5 = sld [smem:[#allocation26_spill]] }
  0xb2   : > { %992 = vmatpush3.bf16.msra.mxu0 %v1139_v2  ;;  %1000 = vmatpush3.bf16.msra.mxu1 %v1143_v5  ;;  %s1983_s24 = sld [smem:[#allocation28_spill]]  ;;  %s1259_s23 = scalar_lea.vmem %s1776_s25, 128 }
  0xb3   : > { %1005 = vmatprep.subr.bf16.mxu0 %v1433_v0  ;;  %v948_v10 = vld [vmem:[%s1980_s22] ss:$0 sm:$0xff]  ;;  %s675_s22 = scalar_lea.sflag [#allocation4], %s1731_s20  ;;  %p1260_p5 = scmp.ne.s32.totalorder %s1776_s25, %s1259_s23 }
  0xb4   : > { %s1435_s26 = smov [#allocation10]  }
  0xb5   : > { %994 = vmatmul.mubr.msk.bf16.vlgmr.msra.gmra.mrb[0].mxu0 %vm470_vm1, %v1141_v4  ;;  %1002 = vmatmul.mubr.msk.bf16.vlgmr.msra.gmra.mrb[0].mxu1 %vm470_vm1, %v1141_v4  ;;  %p1261_p7 = pnand %p1260_p5, %p1663_p3  ;;  %s1263_s19 = sshll.u32 %s1435_s26, 4  ;;  %s1264_s19 = int_to_ptr.vmem [resolvable:$false] %s1263_s19 }
  0xb6   : > { %1006 = vmatpush3.bf16.msra.mxu0 %v1142_v6  ;;  %1009 = vmatprep.mubr.msk.bf16.mxu0 %vm1434_vm0, %v1433_v0  ;;  %p1266_p1 = scmp.lt.s32.totalorder %s1776_s25, %s1264_s19 }
  0xb7   : > { %1007 = vmatprep.subr.bf16.mxu0 %v1433_v0  ;;  %s1774_s3 = scalar_lea.hbm %s1981_s2, %s1766_s27  ;;  %v1781_v25 = vld [vmem:[%s1982_s5] ss:$0 sm:$0xff]  ;;  %p1262_p11 = pneg %p1261_p7 }
  0xb8   : > { %s1790_s1 = scalar_lea.hbm %s1983_s24, %s1766_s27 }
  0xba   : > { %1008 = vmatpush3.bf16.msra.mxu0 %v1144_v7 }
  0xbd   : > { %1010 = vmatmul.mubr.msk.bf16.vlgmr.msra.gmra.mrb[4].mxu0 %vm470_vm1, %v1141_v4 }
 0x188   : > { %v508_v9 = vpop.f32.mrb[0].mxu0  ;;  %v583_v14 = vpop.f32.mrb[0].mxu1 }
 0x189   : > { %v509_v11 = vadd.f32 %v941_v8, %v508_v9  ;;  %v995_v12 = vpop.f32.mrb[1].mxu0  ;;  %v584_v18 = vadd.f32 %v948_v10, %v583_v14  ;;  %v1003_v19 = vpop.f32.mrb[1].mxu1 }
 0x18a   : > { %v511_v13 = vpop.f32.mrb[2].mxu0  ;;  %v586_v20 = vpop.f32.mrb[2].mxu1 }
 0x18b   : > { %v974_v15 = vpack.c.bf16 %v509_v11, %v509_v11  ;;  %v512_v16 = vadd.f32 %v941_v8, %v511_v13  ;;  %v996_v17 = vpop.f32.mrb[3].mxu0  ;;  %v976_v22 = vpack.c.bf16 %v584_v18, %v584_v18  ;;  %v587_v23 = vadd.f32 %v948_v10, %v586_v20  ;;  %v1004_v24 = vpop.f32.mrb[3].mxu1 }
 0x18d   : > { %524 = vst.msk [vmem:[%s420_s29] sm:$0xf] %vm523_vm2, %v974_v15  ;;  %v975_v21 = vpack.c.bf16 %v512_v16, %v512_v16  ;;  %598 = vst.msk [vmem:[%s1763_s12] sm:$0xf] %vm523_vm2, %v976_v22  ;;  %v977_v26 = vpack.c.bf16 %v587_v23, %v587_v23 }
 0x18f   : > { %525 = vst.msk [vmem:[%s420_s29 + $0x4] sm:$0xf] %vm523_vm2, %v975_v21  ;;  %s1265_s29 = scalar_lea.vmem %s1264_s19, 256 }
 0x190   : > { %v657_v27 = vpop.f32.mrb[4].mxu0  ;;  %p1267_p4 = scmp.lt.s32.totalorder %s1265_s29, %s1259_s23 }
 0x192   : > { %p1268_p8 = por %p1267_p4, %p1266_p1 }
 0x194   : > { %p1269_p12 = pnand %p1268_p8, %p1262_p11 }
 0x196   : > { %1272 = shalt.err (!%p1269_p12)
}
 0x197   : > { %s1273_s21 = scalar_lea.hbm %s1774_s3, 128  ;;  %s1277_s6 = scalar_lea.hbm %s1981_s2, 512 }
 0x198   : > { %p1274_p13 = scmp.ne.s32.totalorder %s1774_s3, %s1273_s21  ;;  %p1278_p6 = scmp.lt.u32.totalorder %s1774_s3, %s1981_s2 }
 0x199   : > { %p1279_p0 = scmp.lt.u32.totalorder %s1277_s6, %s1273_s21  ;;  %p1281_p5 = scmp.lt.u32.totalorder %s1273_s21, %s1774_s3 }
 0x19a   : > { %p1275_p2 = pnand %p1274_p13, %p1663_p3 }
 0x19b   : > { %p1280_p10 = por %p1279_p0, %p1278_p6 }
 0x19c   : > { %p1276_p9 = pneg %p1275_p2 }
 0x19d   : > { %p1282_p7 = por %p1281_p5, %p1280_p10 }
 0x19f   : > { %p1283_p11 = pnand %p1282_p7, %p1276_p9 }
 0x1a1   : > { %1286 = shalt.err (!%p1283_p11)
}
 0x1a2   : > { %s1436_s23 = smov 64   ;;  %s1437_s29 = smov 4   ;;  %599 = vst.msk [vmem:[%s1763_s12 + $0x4] sm:$0xf] %vm523_vm2, %v977_v26  ;;  %v658_v28 = vadd.f32 %v1781_v25, %v657_v27  ;;  %v1011_v29 = vpop.f32.mrb[5].mxu0 }
 0x1a3   : > { %1027 = dma.vmem_to_hbm [thread:$0]  (%p1663_p3), %s1776_s25, 128, %s1774_s3, %s675_s22, %s1436_s23, %s1436_s23, %s1437_s29   ;;  %v660_v30 = vpop.f32.mrb[6].mxu0 }
 0x1a4   : > { %s1825_s21 = scalar_lea.vmem [#allocation13], %s1734_s28  ;;  %s1830_s7 = scalar_lea.sflag [#allocation12], %s679_s30 }
 0x1a5   : > { %s736_s5 = sshll.u32 %s1825_s21, 4  ;;  %s1287_s6 = scalar_lea.vmem %s1792_s13, 128  ;;  %s1862_s5 = int_to_ptr.vmem [resolvable:$true] %s736_s5 }
 0x1a6   : > { %p1288_p1 = scmp.ne.s32.totalorder %s1792_s13, %s1287_s6  ;;  %s1438_s20 = smov [#allocation11]  }
 0x1a7   : > { %s1291_s25 = sshll.u32 %s1438_s20, 4  ;;  %s1292_s25 = int_to_ptr.vmem [resolvable:$false] %s1291_s25 }
 0x1a8   : > { %p1289_p4 = pnand %p1288_p1, %p1663_p3  ;;  %s1293_s12 = scalar_lea.vmem %s1292_s25, 256 }
 0x1a9   : > { %p1294_p12 = scmp.lt.s32.totalorder %s1792_s13, %s1292_s25  ;;  %p1295_p13 = scmp.lt.s32.totalorder %s1293_s12, %s1287_s6 }
 0x1aa   : > { %p1290_p8 = pneg %p1289_p4 }
 0x1ab   : > { %p1296_p2 = por %p1295_p13, %p1294_p12 }
 0x1ad   : > { %p1297_p9 = pnand %p1296_p2, %p1290_p8 }
 0x1af   : > { %1300 = shalt.err (!%p1297_p9)
}
 0x1b0   : > { %s1301_s17 = scalar_lea.hbm %s1790_s1, 128  ;;  %s1305_s3 = scalar_lea.hbm %s1983_s24, 512 }
 0x1b1   : > { %p1302_p6 = scmp.ne.s32.totalorder %s1790_s1, %s1301_s17  ;;  %p1306_p5 = scmp.lt.u32.totalorder %s1790_s1, %s1983_s24 }
 0x1b2   : > { %p1307_p7 = scmp.lt.u32.totalorder %s1305_s3, %s1301_s17  ;;  %p1309_p1 = scmp.lt.u32.totalorder %s1301_s17, %s1790_s1 }
 0x1b3   : > { %p1303_p0 = pnand %p1302_p6, %p1663_p3 }
 0x1b4   : > { %p1308_p11 = por %p1307_p7, %p1306_p5 }
 0x1b5   : > { %p1304_p10 = pneg %p1303_p0 }
 0x1b6   : > { %p1310_p4 = por %p1309_p1, %p1308_p11 }
 0x1b8   : > { %p1311_p8 = pnand %p1310_p4, %p1304_p10 }
 0x1ba   : > { %1314 = shalt.err (!%p1311_p8)
}
 0x1bb   : > { %1028 = dma.vmem_to_hbm [thread:$0]  (%p1663_p3), %s1792_s13, 128, %s1790_s1, %s1830_s7, %s1436_s23, %s1436_s23, %s1437_s29   ;;  %v978_v31 = vpack.c.bf16 %v658_v28, %v658_v28  ;;  %v661_v32 = vadd.f32 %v1781_v25, %v660_v30  ;;  %v1012_v33 = vpop.f32.mrb[7].mxu0 }
 0x1bc   : > { %s1984_s20 = sld [smem:[#allocation29_spill]]  ;;  %s1315_s13 = scalar_lea.vmem %s1862_s5, 128 }
 0x1bd   : > { %672 = vst.msk [vmem:[%s1825_s21] sm:$0xf] %vm523_vm2, %v978_v31  ;;  %v979_v34 = vpack.c.bf16 %v661_v32, %v661_v32  ;;  %p1316_p12 = scmp.ne.s32.totalorder %s1862_s5, %s1315_s13  ;;  %s1439_s1 = smov [#allocation13]  }
 0x1be   : > { %s1319_s12 = sshll.u32 %s1439_s1, 4  ;;  %s1320_s12 = int_to_ptr.vmem [resolvable:$false] %s1319_s12 }
 0x1bf   : > { %673 = vst.msk [vmem:[%s1825_s21 + $0x4] sm:$0xf] %vm523_vm2, %v979_v34  ;;  %p1317_p13 = pnand %p1316_p12, %p1663_p3  ;;  %s1321_s17 = scalar_lea.vmem %s1320_s12, 256 }
 0x1c0   : > { %p1322_p9 = scmp.lt.s32.totalorder %s1862_s5, %s1320_s12  ;;  %p1323_p6 = scmp.lt.s32.totalorder %s1321_s17, %s1315_s13 }
 0x1c1   : > { %p1318_p2 = pneg %p1317_p13 }
 0x1c2   : > { %s1868_s25 = scalar_lea.hbm %s1984_s20, %s1766_s27  ;;  %p1324_p0 = por %p1323_p6, %p1322_p9 }
 0x1c4   : > { %p1325_p10 = pnand %p1324_p0, %p1318_p2 }
 0x1c6   : > { %1328 = shalt.err (!%p1325_p10)
}
 0x1c7   : > { %s1329_s27 = scalar_lea.hbm %s1868_s25, 128  ;;  %s1333_s30 = scalar_lea.hbm %s1984_s20, 512 }
 0x1c8   : > { %p1330_p5 = scmp.ne.s32.totalorder %s1868_s25, %s1329_s27  ;;  %p1334_p1 = scmp.lt.u32.totalorder %s1868_s25, %s1984_s20 }
 0x1c9   : > { %p1335_p4 = scmp.lt.u32.totalorder %s1333_s30, %s1329_s27  ;;  %p1337_p12 = scmp.lt.u32.totalorder %s1329_s27, %s1868_s25 }
 0x1ca   : > { %p1331_p7 = pnand %p1330_p5, %p1663_p3 }
 0x1cb   : > { %p1336_p8 = por %p1335_p4, %p1334_p1 }
 0x1cc   : > { %p1332_p11 = pneg %p1331_p7 }
 0x1cd   : > { %p1338_p13 = por %p1337_p12, %p1336_p8 }
 0x1cf   : > { %p1339_p2 = pnand %p1338_p13, %p1332_p11 }
 0x1d1   : > { %1342 = shalt.err (!%p1339_p2)
}
 0x1d2   : > { %1029 = dma.vmem_to_hbm [thread:$0]  (%p1663_p3), %s1862_s5, 128, %s1868_s25, %s1830_s7, %s1436_s23, %s1436_s23, %s1437_s29  }
 0x1d3 PF: > { %s1985_s26 = sld [smem:[#allocation19_spill]]  ;;  %s1986_s19 = sld [smem:[#allocation20_spill]] }
 0x1d4   : > { %p1064_p9 = scmp.ge.s32.totalorder %s1425_s16, 2 }
 0x1d9   : > { %s751_s6 = sand.u32 1, %s1985_s26   ;;  %p1987_p6 = scmp.ne.s32.totalorder %s1986_s19, 0 }
 0x1da   : > { %s752_s13 = scalar_lea.sflag [#allocation4], %s751_s6 }
 0x1db   : > { %p1048_p0 = pnand %p1064_p9, %p1987_p6 }
 0x1dd   : > { %1388 = dma.done.wait (!%p1048_p0), %s752_s13, 128  }
 0x1de   : > { %1390 = vsyncadd (!%p1048_p0), %s752_s13, 4294967168  ;;  %s1988_s8 = sadd.s32 4294967294, %s1425_s16  }
 0x1df   : > { %s760_s1 = sand.u32 1, %s1988_s8  }
 0x1e0   : > { %s761_s12 = scalar_lea.sflag [#allocation12], %s760_s1 }
 0x1e1   : > { %1392 = dma.done.wait (!%p1048_p0), %s761_s12, 256  }
 0x1e2   : > { %1394 = vsyncadd (!%p1048_p0), %s761_s12, 4294967040  ;;  %s31_s16 = sadd.s32 1, %s1425_s16   ;;  %s1989_s23 = sld [smem:[#allocation21_spill]] }
 0x1e3   : > { %p28_p3 = scmp.ge.s32.totalorder %s31_s16, 6   ;;  %s1990_s30 = smov %s1401_s10 }
 0x1e4   : > { %s1991_s10 = smov %s1405_s11  ;;  %s1992_s11 = smov %s1680_s18 }
 0x1e5   : > { %s1993_s12 = smov %s1417_s14  ;;  %s1994_s13 = smov %s1421_s15 }
 0x1e6   : > { %s1995_s14 = smov %s1998_s9  ;;  %30 = sbr.rel (!%p28_p3) target bundleno = 20 (0x14), region = 137 }
 0x1e8   : > { %s1996_s15 = smov %s1989_s23 }
 0x1ed   :  { %775 = vsyncpa [#allocation3], 1 }
 0x1ee   :  { %777 = vsyncpa [#allocation3 + $0x1], 1 }
 0x1ef   :  { %778 = vsyncpa [#allocation6], 1 }
 0x1f0   :  { %779 = vsyncpa [#allocation9], 1 }
 0x1f1   :  { %780 = vsyncpa [#allocation4], 1 }
 0x1f2   :  { %782 = vsyncpa [#allocation4 + $0x1], 1 }
 0x1f3   :  { %783 = vsyncpa [#allocation12], 1 }
 0x1f4   :  { %785 = vsyncpa [#allocation12 + $0x1], 1 }

</bundles_post_ra>
